<compile_context>
chip_gen: v7x
topology: tpu7x:2x2x1
jax: 0.10.0
libtpu: 0.0.40
codegen_flags: <defaults>
</compile_context>

<pallas_src>
import math

import jax
import jax.numpy as jnp
import numpy as np
from jax.experimental import pallas as pl
from jax.experimental.pallas import tpu as pltpu


# ----------------------------------------------------------------------------
# Pallas kernel: one GCN layer  out = relu(A @ XW),  tiled over A.
#   grid  = (n_pad // tm, n_pad // tk)   ("parallel", "arbitrary")
#   a_ref : (tm, tk)        tile (i, k) of the normalized adjacency (bf16/f32)
#   xw_ref: (n_pad, c_pad)  precomputed X @ W, resident across the whole grid
#   o_ref : (tm, c_pad)     f32 output rows; doubles as the accumulator (its
#                           block index is constant along k, so it stays in
#                           VMEM across the reduction).
# ----------------------------------------------------------------------------
def gcn_layer_kernel(a_ref, xw_ref, o_ref):
    k = pl.program_id(1)
    tk = a_ref.shape[1]

    @pl.when(k == 0)
    def _():
        o_ref[...] = jnp.zeros_like(o_ref)

    start = pl.multiple_of(k * tk, tk)
    xw_k = xw_ref[pl.ds(start, tk), :]
    o_ref[...] += jnp.dot(a_ref[...], xw_k, preferred_element_type=jnp.float32)

    @pl.when(k == pl.num_programs(1) - 1)
    def _():
        o_ref[...] = jnp.maximum(o_ref[...], 0.0)


def _gcn_layer_call(a_pad, xw_pad, tile):
    n_pad = a_pad.shape[0]
    c_pad = xw_pad.shape[1]
    tm = tk = tile
    grid = (n_pad // tm, n_pad // tk)

    cost = pl.CostEstimate(
        flops=2 * n_pad * n_pad * c_pad,
        transcendentals=0,
        bytes_accessed=int(n_pad * n_pad * a_pad.dtype.itemsize
                           + n_pad * c_pad * xw_pad.dtype.itemsize
                           + n_pad * c_pad * 4),
    )

    # TODO(synk): the resident XW spec could use pipeline_mode=pl.Buffered(1)
    # (constant block index) to drop its second pipeline buffer; the saving is
    # only n_pad*c_pad*itemsize of VMEM so it is left at the default.
    return pl.pallas_call(
        gcn_layer_kernel,
        out_shape=jax.ShapeDtypeStruct((n_pad, c_pad), jnp.float32),
        grid_spec=pltpu.PrefetchScalarGridSpec(
            num_scalar_prefetch=0,
            grid=grid,
            in_specs=[
                pl.BlockSpec((tm, tk), lambda i, k: (i, k)),        # A tile
                pl.BlockSpec((n_pad, c_pad), lambda i, k: (0, 0)),  # XW resident
            ],
            out_specs=pl.BlockSpec((tm, c_pad), lambda i, k: (i, 0)),
        ),
        compiler_params=pltpu.CompilerParams(
            dimension_semantics=("parallel", "arbitrary"),
            vmem_limit_bytes=48 * 1024 * 1024,   # safe on v7x (64 MiB physical)
        ),
        cost_estimate=cost,
    )(a_pad, xw_pad)


# ----------------------------------------------------------------------------
# Plain-JAX glue
# ----------------------------------------------------------------------------
def gru_evolve(w0, wi, wh, bi, bh):
    """One GRU step applied to the rows of W0 (input = hidden = W0)."""
    r = jax.nn.sigmoid(w0 @ wi[0] + bi[0] + w0 @ wh[0] + bh[0])
    z = jax.nn.sigmoid(w0 @ wi[1] + bi[1] + w0 @ wh[1] + bh[1])
    n = jnp.tanh(w0 @ wi[2] + bi[2] + r * (w0 @ wh[2] + bh[2]))
    return (1.0 - z) * n + z * w0


def normalized_adjacency(edge_index, edge_weight, num_nodes, n_pad, dtype):
    """gcn_norm (self loops + symmetric normalization) scattered straight into
    a zero-padded dense (n_pad, n_pad) matrix of the requested dtype."""
    # TODO(synk): PyG's gcn_norm uses add_remaining_self_loops; this adds a
    # weight-1 self loop unconditionally (differs iff self loops pre-exist).
    src = edge_index[0]
    dst = edge_index[1]
    loop = jnp.arange(num_nodes, dtype=src.dtype)
    src = jnp.concatenate([src, loop])
    dst = jnp.concatenate([dst, loop])
    ew = jnp.concatenate([edge_weight,
                          jnp.ones((num_nodes,), edge_weight.dtype)])
    deg = jnp.zeros((num_nodes,), ew.dtype).at[dst].add(ew)
    dinv = jnp.where(deg > 0, jax.lax.rsqrt(deg), 0.0)
    norm = dinv[src] * ew * dinv[dst]
    # out[i] = sum_{edges j->i} norm * h[j]   =>   A[i, j] += norm
    return jnp.zeros((n_pad, n_pad), dtype).at[dst, src].add(norm.astype(dtype))


def _round_up(v, m):
    return ((v + m - 1) // m) * m


def _tile_efficiency(t):
    """Approx. fraction of HBM roofline achieved by a mem-bound tiled kernel
    as a function of (square) tile size (measured: 128->0.29 ... 1024->0.86)."""
    table = ((128, 0.29), (256, 0.63), (384, 0.75), (512, 0.85), (1024, 0.86))
    if t >= table[-1][0]:
        return table[-1][1]
    for (t0, e0), (t1, e1) in zip(table, table[1:]):
        if t <= t1:
            return e0 + (e1 - e0) * (t - t0) / (t1 - t0)
    return table[-1][1]


def _choose_tiles(n, elem_bytes):
    """Pick a square A tile t and the padded node count n_pad (multiple of t).

    Trades padded-area waste (A traffic ~ n_pad^2) against per-grid-step
    overhead / DMA efficiency.  The tile cap keeps the double-buffered A tile
    <= 16 MiB (fits v7x's 64 MiB VMEM; trivial on v5e/v6e), and >=2 row tiles
    are preserved whenever possible so both v7x TensorCores get work.
    """
    n128 = _round_up(max(n, 1), 128)
    max_tile = 2048 if elem_bytes <= 2 else 1024
    best = None
    t = 128
    while t <= min(max_tile, n128):
        n_pad = _round_up(n128, t)
        if n128 >= 256 and n_pad // t < 2:
            t += 128
            continue
        cost = (n_pad * n_pad) / _tile_efficiency(t)
        if best is None or cost < best[0]:
            best = (cost, t, n_pad)
        t += 128
    if best is None:
        return n128, n128
    return best[1], best[2]


# ----------------------------------------------------------------------------
# Forward wrapper
# ----------------------------------------------------------------------------
def egcno_forward(x, edge_index, edge_weight, params1, params2,
                  *, use_f32=False):
    n, c = x.shape
    cdt = jnp.float32 if use_f32 else jnp.bfloat16
    elem = jnp.dtype(cdt).itemsize
    c_pad = _round_up(c, 128)             # lane-dense channel dimension
    tile, n_pad = _choose_tiles(n, elem)

    # Dominant HBM stream: A in bf16 by default, built directly into the
    # padded buffer (f32 accumulation happens inside the kernel).
    a_pad = normalized_adjacency(edge_index, edge_weight, n, n_pad, cdt)

    # GRU weight evolution (tiny) stays in plain JAX.
    w1 = gru_evolve(*params1)
    w2 = gru_evolve(*params2)

    x32 = x.astype(jnp.float32)

    # Layer 1: precompute XW once (resident kernel operand), out = relu(A@XW).
    xw1 = jnp.zeros((n_pad, c_pad), jnp.float32).at[:n, :c].set(x32 @ w1)
    h = _gcn_layer_call(a_pad, xw1.astype(cdt), tile)     # (n_pad, c_pad) f32
    # F.dropout: identity in eval mode.

    # Layer 2: h already lives in the padded layout; pad W2 instead.
    w2_pad = jnp.zeros((c_pad, c_pad), jnp.float32).at[:c, :c].set(w2)
    xw2 = h @ w2_pad
    h = _gcn_layer_call(a_pad, xw2.astype(cdt), tile)

    return h[:n, :c]


# ----------------------------------------------------------------------------
# Deterministic parameter init (mirrors PyTorch shapes: initial_weight (C,C),
# nn.GRU(input=C, hidden=C) -> weight_ih/hh (3C, C), bias_ih/hh (3C,)).
# Gate weights stored pre-transposed and split per gate: (3, C, C).
# ----------------------------------------------------------------------------
def init_layer_params(key, c):
    ks = jax.random.split(key, 5)
    stdv = 1.0 / math.sqrt(c)
    w0 = jax.random.uniform(ks[0], (c, c), jnp.float32, -stdv, stdv)
    wi = jax.random.uniform(ks[1], (3, c, c), jnp.float32, -stdv, stdv)
    wh = jax.random.uniform(ks[2], (3, c, c), jnp.float32, -stdv, stdv)
    bi = jax.random.uniform(ks[3], (3, 1, c), jnp.float32, -stdv, stdv)
    bh = jax.random.uniform(ks[4], (3, 1, c), jnp.float32, -stdv, stdv)
    return (w0, wi, wh, bi, bh)


# Pure-JAX reference (same math, full f32) for correctness checks.
def _reference(x, edge_index, edge_weight, params1, params2):
    n = x.shape[0]
    a = normalized_adjacency(edge_index, edge_weight, n, n, jnp.float32)
    h = jnp.maximum(a @ (x @ gru_evolve(*params1)), 0.0)
    h = jnp.maximum(a @ (h @ gru_evolve(*params2)), 0.0)
    return h


def _make_graph(key, n, c, e):
    k_x, k_src, k_dst, k_w = jax.random.split(key, 4)
    x = jax.random.normal(k_x, (n, c), jnp.float32)
    edge_index = jnp.stack([
        jax.random.randint(k_src, (e,), 0, n),
        jax.random.randint(k_dst, (e,), 0, n),
    ]).astype(jnp.int32)
    edge_weight = jax.random.uniform(k_w, (e,), jnp.float32, 0.1, 1.0)
    return x, edge_index, edge_weight


if __name__ == "__main__":
    key = jax.random.PRNGKey(0)
    k_g1, k_g2, k_p1, k_p2 = jax.random.split(key, 4)

    C = 32
    params1 = init_layer_params(k_p1, C)
    params2 = init_layer_params(k_p2, C)

    # --- Small graph (1x1 grid): default bf16-A path + f32 opt-out. ---
    N1, E1 = 16, 48
    x1, ei1, ew1 = _make_graph(k_g1, N1, C, E1)
    ref1 = _reference(x1, ei1, ew1, params1, params2)

    out1 = jax.block_until_ready(egcno_forward(x1, ei1, ew1, params1, params2))
    np.testing.assert_allclose(np.asarray(out1), np.asarray(ref1),
                               rtol=5e-2, atol=2e-1)

    out1_f32 = jax.block_until_ready(
        egcno_forward(x1, ei1, ew1, params1, params2, use_f32=True))
    np.testing.assert_allclose(np.asarray(out1_f32), np.asarray(ref1),
                               rtol=1e-5, atol=1e-5)

    # --- Larger graph: N=600 pads to 768 with 384x384 tiles (2x2 grid),
    #     exercising the k-reduction accumulate + the padded rows/cols. ---
    N2, E2 = 600, 2000
    x2, ei2, ew2 = _make_graph(k_g2, N2, C, E2)
    ref2 = _reference(x2, ei2, ew2, params1, params2)

    out2 = jax.block_until_ready(egcno_forward(x2, ei2, ew2, params1, params2))
    np.testing.assert_allclose(np.asarray(out2), np.asarray(ref2),
                               rtol=5e-2, atol=2e-1)

    out2_f32 = jax.block_until_ready(
        egcno_forward(x2, ei2, ew2, params1, params2, use_f32=True))
    np.testing.assert_allclose(np.asarray(out2_f32), np.asarray(ref2),
                               rtol=1e-4, atol=1e-4)

    print("KERNEL_OK")
</pallas_src>

<mosaic_0001>
module attributes {stable_mosaic.version = 11 : i64} {
  func.func @gcn_layer_kernel(%arg0: i32, %arg1: i32, %arg2: memref<128x128xbf16, #tpu.memory_space<vmem>>, %arg3: memref<128x128xbf16, #tpu.memory_space<vmem>>, %arg4: memref<128x128xf32, #tpu.memory_space<vmem>>) attributes {dimension_semantics = [#tpu.dimension_semantics<parallel>, #tpu.dimension_semantics<arbitrary>], iteration_bounds = array<i64: 1, 1>, scalar_prefetch = 0 : i64, scratch_operands = 0 : i64, tpu.core_type = #tpu.core_type<tc>, window_params = [{transform_indices = @transform_0, window_bounds = array<i64: 128, 128>}, {pipeline_mode = #tpu.pipeline_mode<synchronous>, transform_indices = @transform_1, window_bounds = array<i64: 128, 128>}, {transform_indices = @transform_2, window_bounds = array<i64: 128, 128>}]} {
    %c0_i32 = arith.constant 0 : i32
    %0 = arith.cmpi eq, %arg1, %c0_i32 : i32
    %1 = arith.extui %0 : i1 to i32
    %c0_i32_0 = arith.constant 0 : i32
    %2 = arith.cmpi ne, %1, %c0_i32_0 : i32
    scf.if %2 {
      %cst_9 = arith.constant 0.000000e+00 : f32
      %15 = vector.broadcast %cst_9 : f32 to vector<128x128xf32>
      %c0_10 = arith.constant 0 : index
      %c0_11 = arith.constant 0 : index
      %16 = vector.load %arg4[%c0_10, %c0_11] : memref<128x128xf32, #tpu.memory_space<vmem>>, vector<128x128xf32>
      tpu.vector_store %arg4[%c0_10, %c0_11], %15 {strides = array<i32>} : memref<128x128xf32, #tpu.memory_space<vmem>>, vector<128x128xf32>,
    } else {
    }
    %c128_i32 = arith.constant 128 : i32
    %3 = arith.muli %arg1, %c128_i32 : i32
    %4 = tpu.assume_multiple %3, 128 : i32
    %5 = arith.index_cast %4 : i32 to index
    %c0 = arith.constant 0 : index
    %6 = vector.load %arg3[%5, %c0] : memref<128x128xbf16, #tpu.memory_space<vmem>>, vector<128x128xbf16>
    %c0_1 = arith.constant 0 : index
    %c0_2 = arith.constant 0 : index
    %7 = vector.load %arg4[%c0_1, %c0_2] : memref<128x128xf32, #tpu.memory_space<vmem>>, vector<128x128xf32>
    %c0_3 = arith.constant 0 : index
    %c0_4 = arith.constant 0 : index
    %8 = vector.load %arg2[%c0_3, %c0_4] : memref<128x128xbf16, #tpu.memory_space<vmem>>, vector<128x128xbf16>
    %cst = arith.constant dense<0.000000e+00> : vector<128x128xf32>
    %9 = tpu.matmul %8, %6, %cst {dimension_numbers = #tpu.dot_dimension_numbers<[1], [0], [0], [1], [0, 0, 1, 1], [], []>} : vector<128x128xbf16>, vector<128x128xbf16>, vector<128x128xf32> -> vector<128x128xf32>
    %10 = arith.addf %7, %9 : vector<128x128xf32>
    %c0_5 = arith.constant 0 : index
    %c0_6 = arith.constant 0 : index
    %11 = vector.load %arg4[%c0_5, %c0_6] : memref<128x128xf32, #tpu.memory_space<vmem>>, vector<128x128xf32>
    tpu.vector_store %arg4[%c0_5, %c0_6], %10 {strides = array<i32>} : memref<128x128xf32, #tpu.memory_space<vmem>>, vector<128x128xf32>,
    %c0_i32_7 = arith.constant 0 : i32
    %12 = arith.cmpi eq, %arg1, %c0_i32_7 : i32
    %13 = arith.extui %12 : i1 to i32
    %c0_i32_8 = arith.constant 0 : i32
    %14 = arith.cmpi ne, %13, %c0_i32_8 : i32
    scf.if %14 {
      %c0_9 = arith.constant 0 : index
      %c0_10 = arith.constant 0 : index
      %15 = vector.load %arg4[%c0_9, %c0_10] : memref<128x128xf32, #tpu.memory_space<vmem>>, vector<128x128xf32>
      %cst_11 = arith.constant 0.000000e+00 : f32
      %16 = vector.broadcast %cst_11 : f32 to vector<128x128xf32>
      %17 = arith.maximumf %15, %16 : vector<128x128xf32>
      %c0_12 = arith.constant 0 : index
      %c0_13 = arith.constant 0 : index
      %18 = vector.load %arg4[%c0_12, %c0_13] : memref<128x128xf32, #tpu.memory_space<vmem>>, vector<128x128xf32>
      tpu.vector_store %arg4[%c0_12, %c0_13], %17 {strides = array<i32>} : memref<128x128xf32, #tpu.memory_space<vmem>>, vector<128x128xf32>,
    } else {
    }
    return
  }
  func.func @transform_0(%arg0: i32, %arg1: i32) -> (i32, i32) {
    %c0_i32 = arith.constant 0 : i32
    return %arg0, %arg1 : i32, i32
  }
  func.func @transform_1(%arg0: i32, %arg1: i32) -> (i32, i32) {
    %c0_i32 = arith.constant 0 : i32
    %c0_i32_0 = arith.constant 0 : i32
    %c0_i32_1 = arith.constant 0 : i32
    return %c0_i32, %c0_i32_0 : i32, i32
  }
  func.func @transform_2(%arg0: i32, %arg1: i32) -> (i32, i32) {
    %c0_i32 = arith.constant 0 : i32
    %c0_i32_0 = arith.constant 0 : i32
    return %arg0, %c0_i32 : i32, i32
  }
}

</mosaic_0001>

<bundles_post_ra>
// kernel: tpu_custom_call.1
= control target key start
LH: loop header
LB: loop body
LE: loop exit
PB: predicated region body
PF: predicated region fallthrough
CT: control target
= control target key end

     0   :  { %7 = vsyncpa [#allocation3], 0  ;;  %s644_s0 = inlined_call_operand.hbm [shape: bf16[128,128], index: 0, kind: input, shape index: {}]   ;;  %s645_s1 = inlined_call_operand.hbm [shape: bf16[128,128], index: 1, kind: input, shape index: {}]   ;;  %s646_s2 = inlined_call_operand.hbm [shape: f32[128,128], index: 2, kind: output, shape index: {}]  }
   0x1   :  { %8 = vsyncpa [#allocation6], 0 }
   0x2   :  { %9 = vsyncpa [#allocation4], 0  ;;  %s586_s9 = smov [#allocation2]   ;;  %s514_s13 = scalar_lea.hbm %s644_s0, 1024 }
   0x3   :  { %s15_s10 = sshll.u32 %s586_s9, 4  ;;  %p515_p0 = scmp.ne.s32.totalorder %s644_s0, %s514_s13  ;;  %s16_s10 = int_to_ptr.vmem [resolvable:$true] %s15_s10 }
   0x4   :  { %p518_p1 = scmp.lt.u32.totalorder %s514_s13, %s644_s0 }
   0x6   :  { %p520_p2 = pnand %p518_p1, %p515_p0 }
   0x8   :  { %523 = shalt.err (!%p520_p2)
}
   0x9   :  { %s524_s18 = scalar_lea.vmem %s16_s10, 1024  ;;  %p529_p4 = scmp.lt.s32.totalorder %s16_s10, %s16_s10 }
   0xa   :  { %p525_p3 = scmp.ne.s32.totalorder %s16_s10, %s524_s18  ;;  %p530_p5 = scmp.lt.s32.totalorder %s524_s18, %s524_s18 }
   0xc   :  { %p531_p6 = por %p530_p5, %p529_p4 }
   0xe   :  { %p532_p7 = pnand %p531_p6, %p525_p3 }
  0x10   :  { %535 = shalt.err (!%p532_p7)
}
  0x11   :  { %s587_s19 = smov 64   ;;  %s588_s20 = smov 4  }
  0x12   :  { %21 = dma.hbm_to_vmem [thread:$0]  %s644_s0, 1024, %s16_s10, [#allocation3], %s587_s19, %s587_s19, %s588_s20  }
  0x13   :  { %s589_s23 = smov [#allocation5]   ;;  %s536_s27 = scalar_lea.hbm %s645_s1, 1024 }
  0x14   :  { %s27_s24 = sshll.u32 %s589_s23, 4  ;;  %p537_p8 = scmp.ne.s32.totalorder %s645_s1, %s536_s27  ;;  %s28_s24 = int_to_ptr.vmem [resolvable:$true] %s27_s24 }
  0x15   :  { %p540_p9 = scmp.lt.u32.totalorder %s536_s27, %s645_s1 }
  0x17   :  { %p542_p10 = pnand %p540_p9, %p537_p8 }
  0x19   :  { %545 = shalt.err (!%p542_p10)
}
  0x1a   :  { %s546_s4 = scalar_lea.vmem %s28_s24, 1024  ;;  %p551_p12 = scmp.lt.s32.totalorder %s28_s24, %s28_s24 }
  0x1b   :  { %p547_p11 = scmp.ne.s32.totalorder %s28_s24, %s546_s4  ;;  %p552_p13 = scmp.lt.s32.totalorder %s546_s4, %s546_s4 }
  0x1d   :  { %p553_p0 = por %p552_p13, %p551_p12 }
  0x1f   :  { %p554_p1 = pnand %p553_p0, %p547_p11 }
  0x21   :  { %557 = shalt.err (!%p554_p1)
}
  0x22   :  { %33 = dma.hbm_to_vmem [thread:$0]  %s645_s1, 1024, %s28_s24, [#allocation6], %s587_s19, %s587_s19, %s588_s20  }
  0x23   :  { %580 = dma.done.wait [#allocation3], 1024  }
  0x24   :  { %581 = vsyncadd [#allocation3], 4294966272 }
  0x25   :  { %582 = dma.done.wait [#allocation6], 1024  }
  0x26   :  { %583 = vsyncadd [#allocation6], 4294966272  ;;  %v498_v0 = vld [vmem:[#allocation5] sm:$0xff]   ;;  %v499_v1 = vld [vmem:[#allocation5 + $0x8] sm:$0xff]   ;;  %s590_s1 = smov [#allocation7]  }
  0x27   :  { %442 = vmatprep.subr.bf16.mxu0 %v498_v0  ;;  %474 = vmatprep.subr.bf16.mxu1 %v498_v0  ;;  %v500_v2 = vld [vmem:[#allocation5 + $0x10] sm:$0xff]   ;;  %v501_v3 = vld [vmem:[#allocation5 + $0x18] sm:$0xff]   ;;  %v506_v4 = vld [vmem:[#allocation2] sm:$0xff]   ;;  %s395_s6 = sshll.u32 %s590_s1, 4  ;;  %s396_s6 = int_to_ptr.vmem [resolvable:$true] %s395_s6 }
  0x28   :  { %443 = vmatpush3.bf16.msra.mxu0 %v498_v0  ;;  %482 = vmatpush3.bf16.msra.mxu1 %v498_v0  ;;  %v507_v5 = vld [vmem:[#allocation2 + $0x20] sm:$0xff]   ;;  %v503_v7 = vld [vmem:[#allocation5 + $0x28] sm:$0xff]   ;;  %v504_v8 = vld [vmem:[#allocation5 + $0x30] sm:$0xff]   ;;  %s558_s7 = scalar_lea.vmem %s396_s6, 2048  ;;  %p563_p3 = scmp.lt.s32.totalorder %s396_s6, %s396_s6 }
  0x29   :  { %444 = vmatprep.subr.bf16.mxu0 %v499_v1  ;;  %475 = vmatprep.subr.bf16.mxu1 %v499_v1  ;;  %v502_v6 = vld [vmem:[#allocation5 + $0x20] sm:$0xff]   ;;  %v505_v9 = vld [vmem:[#allocation5 + $0x38] sm:$0xff]   ;;  %v508_v10 = vld [vmem:[#allocation2 + $0x8] sm:$0xff]   ;;  %p559_p2 = scmp.ne.s32.totalorder %s396_s6, %s558_s7  ;;  %p564_p4 = scmp.lt.s32.totalorder %s558_s7, %s558_s7 }
  0x2a   :  { %458 = vmatprep.mubr.bf16.mxu0 %v506_v4  ;;  %466 = vmatprep.mubr.bf16.mxu1 %v507_v5  ;;  %v509_v11 = vld [vmem:[#allocation2 + $0x28] sm:$0xff]   ;;  %v510_v12 = vld [vmem:[#allocation2 + $0x10] sm:$0xff]   ;;  %v512_v14 = vld [vmem:[#allocation2 + $0x18] sm:$0xff]  }
  0x2b   :  { %v511_v13 = vld [vmem:[#allocation2 + $0x30] sm:$0xff]   ;;  %v513_v15 = vld [vmem:[#allocation2 + $0x38] sm:$0xff]   ;;  %p565_p5 = por %p564_p4, %p563_p3 }
  0x2c   :  { %445 = vmatpush3.bf16.msra.mxu0 %v499_v1  ;;  %483 = vmatpush3.bf16.msra.mxu1 %v499_v1 }
  0x2d   :  { %446 = vmatprep.subr.bf16.mxu0 %v500_v2  ;;  %476 = vmatprep.subr.bf16.mxu1 %v500_v2  ;;  %p566_p6 = pnand %p565_p5, %p559_p2 }
  0x30   :  { %447 = vmatpush3.bf16.msra.mxu0 %v500_v2  ;;  %484 = vmatpush3.bf16.msra.mxu1 %v500_v2 }
  0x31   :  { %448 = vmatprep.subr.bf16.mxu0 %v501_v3  ;;  %477 = vmatprep.subr.bf16.mxu1 %v501_v3 }
  0x34   :  { %449 = vmatpush3.bf16.msra.mxu0 %v501_v3  ;;  %485 = vmatpush3.bf16.msra.mxu1 %v501_v3 }
  0x35   :  { %450 = vmatprep.subr.bf16.mxu0 %v502_v6  ;;  %478 = vmatprep.subr.bf16.mxu1 %v502_v6 }
  0x38   :  { %451 = vmatpush3.bf16.msra.mxu0 %v502_v6  ;;  %486 = vmatpush3.bf16.msra.mxu1 %v502_v6 }
  0x39   :  { %452 = vmatprep.subr.bf16.mxu0 %v503_v7  ;;  %479 = vmatprep.subr.bf16.mxu1 %v503_v7 }
  0x3c   :  { %453 = vmatpush3.bf16.msra.mxu0 %v503_v7  ;;  %487 = vmatpush3.bf16.msra.mxu1 %v503_v7 }
  0x3d   :  { %454 = vmatprep.subr.bf16.mxu0 %v504_v8  ;;  %480 = vmatprep.subr.bf16.mxu1 %v504_v8 }
  0x40   :  { %455 = vmatpush3.bf16.msra.mxu0 %v504_v8  ;;  %488 = vmatpush3.bf16.msra.mxu1 %v504_v8 }
  0x41   :  { %456 = vmatprep.subr.bf16.mxu0 %v505_v9  ;;  %481 = vmatprep.subr.bf16.mxu1 %v505_v9 }
  0x44   :  { %457 = vmatpush3.bf16.msra.mxu0 %v505_v9  ;;  %489 = vmatpush3.bf16.msra.mxu1 %v505_v9 }
  0x47   :  { %459 = vmatmul.mubr.bf16.vlgmr.msra.gmra.mrb[0].mxu0 %v508_v10  ;;  %467 = vmatmul.mubr.bf16.vlgmr.msra.gmra.mrb[0].mxu1 %v509_v11 }
  0x48   :  { %462 = vmatprep.mubr.bf16.mxu0 %v510_v12  ;;  %470 = vmatprep.mubr.bf16.mxu1 %v511_v13 }
  0x4f   :  { %463 = vmatmul.mubr.bf16.gmra.mrb[4].mxu0 %v512_v14  ;;  %471 = vmatmul.mubr.bf16.gmra.mrb[4].mxu1 %v513_v15 }
 0x11a   :  { %v460_v16 = vpop.f32.mrb[0].mxu0  ;;  %v468_v17 = vpop.f32.mrb[0].mxu1 }
 0x11b   :  { %v244_v18 = vpop.f32.mrb[1].mxu0  ;;  %v276_v19 = vpop.f32.mrb[1].mxu1  ;;  %v360_v22 = vmax.f32 %v460_v16, 0.0  ;;  %v368_v23 = vmax.f32 %v468_v17, 0.0 }
 0x11c   :  { %v461_v20 = vpop.f32.mrb[2].mxu0  ;;  %v469_v21 = vpop.f32.mrb[2].mxu1  ;;  %v358_v26 = vmax.f32 %v244_v18, 0.0  ;;  %v366_v27 = vmax.f32 %v276_v19, 0.0 }
 0x11d   :  { %v247_v24 = vpop.f32.mrb[3].mxu0  ;;  %v279_v25 = vpop.f32.mrb[3].mxu1  ;;  %376 = vst [vmem:[#allocation7 + $0x10] sm:$0xff] %v360_v22  ;;  %384 = vst [vmem:[#allocation7 + $0x50] sm:$0xff] %v368_v23  ;;  %v361_v28 = vmax.f32 %v461_v20, 0.0  ;;  %v369_v29 = vmax.f32 %v469_v21, 0.0 }
 0x11e   :  { %374 = vst [vmem:[#allocation7] sm:$0xff] %v358_v26  ;;  %382 = vst [vmem:[#allocation7 + $0x40] sm:$0xff] %v366_v27  ;;  %v359_v30 = vmax.f32 %v247_v24, 0.0  ;;  %v367_v31 = vmax.f32 %v279_v25, 0.0 }
 0x11f   :  { %377 = vst [vmem:[#allocation7 + $0x18] sm:$0xff] %v361_v28  ;;  %385 = vst [vmem:[#allocation7 + $0x58] sm:$0xff] %v369_v29 }
 0x120   :  { %375 = vst [vmem:[#allocation7 + $0x8] sm:$0xff] %v359_v30  ;;  %383 = vst [vmem:[#allocation7 + $0x48] sm:$0xff] %v367_v31 }
 0x122   :  { %v464_v32 = vpop.f32.mrb[4].mxu0  ;;  %v472_v33 = vpop.f32.mrb[4].mxu1 }
 0x123   :  { %v260_v34 = vpop.f32.mrb[5].mxu0  ;;  %v292_v35 = vpop.f32.mrb[5].mxu1  ;;  %v364_v38 = vmax.f32 %v464_v32, 0.0  ;;  %v372_v39 = vmax.f32 %v472_v33, 0.0 }
 0x124   :  { %v465_v36 = vpop.f32.mrb[6].mxu0  ;;  %v473_v37 = vpop.f32.mrb[6].mxu1  ;;  %v362_v42 = vmax.f32 %v260_v34, 0.0  ;;  %v370_v43 = vmax.f32 %v292_v35, 0.0 }
 0x125   :  { %v263_v40 = vpop.f32.mrb[7].mxu0  ;;  %v295_v41 = vpop.f32.mrb[7].mxu1  ;;  %380 = vst [vmem:[#allocation7 + $0x30] sm:$0xff] %v364_v38  ;;  %388 = vst [vmem:[#allocation7 + $0x70] sm:$0xff] %v372_v39  ;;  %v365_v44 = vmax.f32 %v465_v36, 0.0  ;;  %v373_v45 = vmax.f32 %v473_v37, 0.0 }
 0x126   :  { %378 = vst [vmem:[#allocation7 + $0x20] sm:$0xff] %v362_v42  ;;  %386 = vst [vmem:[#allocation7 + $0x60] sm:$0xff] %v370_v43  ;;  %v363_v46 = vmax.f32 %v263_v40, 0.0  ;;  %v371_v47 = vmax.f32 %v295_v41, 0.0 }
 0x127   :  { %381 = vst [vmem:[#allocation7 + $0x38] sm:$0xff] %v365_v44  ;;  %389 = vst [vmem:[#allocation7 + $0x78] sm:$0xff] %v373_v45 }
 0x128   :  { %379 = vst [vmem:[#allocation7 + $0x28] sm:$0xff] %v363_v46  ;;  %387 = vst [vmem:[#allocation7 + $0x68] sm:$0xff] %v371_v47 }
 0x129   :  { %569 = shalt.err (!%p566_p6)
}
 0x12a   :  { %s570_s10 = scalar_lea.hbm %s646_s2, 2048 }
 0x12b   :  { %p571_p7 = scmp.ne.s32.totalorder %s646_s2, %s570_s10  ;;  %p574_p8 = scmp.lt.u32.totalorder %s570_s10, %s646_s2 }
 0x12d   :  { %p576_p9 = pnand %p574_p8, %p571_p7 }
 0x12f   :  { %579 = shalt.err (!%p576_p9)
}
 0x130   :  { %s591_s15 = smov 128   ;;  %s592_s16 = smov 8  }
 0x131   :  { %401 = dma.vmem_to_hbm [thread:$0]  %s396_s6, 2048, %s646_s2, [#allocation4], %s591_s15, %s591_s15, %s592_s16  }
 0x132   :  { %584 = dma.done.wait [#allocation4], 2048  }
 0x133   :  { %585 = vsyncadd [#allocation4], 4294965248 }
 0x134   :  { %405 = vsyncpa [#allocation3], 1 }
 0x135   :  { %406 = vsyncpa [#allocation6], 1 }
 0x136   :  { %407 = vsyncpa [#allocation4], 1 }

</bundles_post_ra>
